<compile_context>
chip_gen: v7x
topology: tpu7x:2x2x1
jax: 0.10.0
libtpu: 0.0.40
codegen_flags: <defaults>
</compile_context>

<pallas_src>
import math

import jax
import jax.numpy as jnp
from jax import lax
from jax.experimental import pallas as pl
from jax.experimental.pallas import tpu as pltpu


def _fused_conv1d_gelu_kernel(x_ref, w_ref, b_ref, o_ref, xcol_ref):
    """Fused multi-kernel-size Conv1d + bias + tanh-GeLU for one batch element.

    x_ref   : (1, C_in, L)                    input, length on the 128-lane axis
    w_ref   : (R, K)                          R = num_b*C_out_per, K = max_k*C_in (tap-major)
    b_ref   : (R, 1)                          bias (f32)
    o_ref   : (1, C_out_per, num_b*L)         concatenated (dim=-1) output, lane-dense
    xcol_ref: (K, L) f32 VMEM scratch         im2col slab
    """
    c_in = x_ref.shape[1]
    L = x_ref.shape[2]
    k_dim = w_ref.shape[1]
    max_k = k_dim // c_in
    pad = (max_k - 1) // 2
    c_out_per = o_ref.shape[1]
    num_b = o_ref.shape[2] // L

    x = x_ref[0].astype(jnp.float32)                       # (C_in, L)

    # Build the im2col slab in VMEM: row t*C_in + c holds x[c, j + t - pad].
    # Zero-initialising the scratch realises the "same" zero padding, so no jnp.pad /
    # transpose HBM passes are needed.
    xcol_ref[...] = jnp.zeros_like(xcol_ref)
    for t in range(max_k):                                 # static, unrolled
        s = t - pad
        lo = max(0, -s)
        hi = min(L, L - s)
        xcol_ref[t * c_in:(t + 1) * c_in, lo:hi] = x[:, lo + s:hi + s]

    # One fused MXU matmul: contraction over K = max_k*C_in with every branch's output
    # channels stacked on the N side; f32 accumulation.
    acc = jnp.dot(w_ref[...], xcol_ref[...].astype(w_ref.dtype),
                  preferred_element_type=jnp.float32)      # (R, L)
    acc = acc + b_ref[...]

    # tanh-GeLU exactly as in the PyTorch module (f32, EUP tanh).
    y = 0.5 * acc * (1.0 + jnp.tanh(acc * 0.7978845608 * (1.0 + 0.044715 * acc * acc)))

    # Write each branch's (C_out_per, L) block directly into its slice of the
    # torch.cat(dim=-1) output -> lane-dense stores, no concatenate HBM pass.
    for i in range(num_b):
        o_ref[0, :, i * L:(i + 1) * L] = (
            y[i * c_out_per:(i + 1) * c_out_per, :].astype(o_ref.dtype))


def _pack_params(params, max_k, c_in):
    """Zero-pad each branch's taps to max_k (centered), flatten tap-major and stack all
    branches' output channels -> weights (num_b*C_out_per, max_k*C_in), bias (R, 1)."""
    w_rows, b_rows = [], []
    for (w, b) in params:                                  # w: (C_out_per, C_in, k)
        c_out_per, _, k = w.shape
        off = (max_k - k) // 2                             # center smaller kernels
        w_full = jnp.zeros((c_out_per, max_k, c_in), w.dtype)
        w_full = w_full.at[:, off:off + k, :].set(jnp.transpose(w, (0, 2, 1)))
        w_rows.append(w_full.reshape(c_out_per, max_k * c_in))
        b_rows.append(b)
    w_flat = jnp.concatenate(w_rows, axis=0)
    b_flat = jnp.concatenate(b_rows, axis=0)[:, None].astype(jnp.float32)
    return w_flat, b_flat


def conv1d_forward(x, params, compute_dtype=None):
    """Full module forward. x: (N, C_in, L); params: [(w_k, b_k)] per kernel size.
    Returns (N, C_out_per, L * num_kernels), matching torch.cat(dim=-1)."""
    n, c_in, seq_len = x.shape
    num_b = len(params)
    c_out_per = params[0][0].shape[0]
    max_k = max(w.shape[-1] for (w, _) in params)
    k_dim = max_k * c_in
    r = num_b * c_out_per
    out_dtype = x.dtype

    w_flat, b_flat = _pack_params(params, max_k, c_in)

    if compute_dtype is not None:                          # bf16 matmul path (v5e/v6e/v7x)
        x = x.astype(compute_dtype)
        w_flat = w_flat.astype(compute_dtype)

    flops = 2 * n * r * k_dim * seq_len + 10 * n * r * seq_len
    bytes_accessed = int(
        x.size * x.dtype.itemsize + w_flat.size * w_flat.dtype.itemsize
        + b_flat.size * b_flat.dtype.itemsize
        + n * c_out_per * num_b * seq_len * jnp.dtype(out_dtype).itemsize)

    return pl.pallas_call(
        _fused_conv1d_gelu_kernel,
        out_shape=jax.ShapeDtypeStruct((n, c_out_per, num_b * seq_len), out_dtype),
        grid=(n,),
        in_specs=[
            pl.BlockSpec((1, c_in, seq_len), lambda i: (i, 0, 0)),   # x: L on lanes
            pl.BlockSpec((r, k_dim), lambda i: (0, 0)),              # fused weights (resident)
            pl.BlockSpec((r, 1), lambda i: (0, 0)),                  # fused bias (resident)
        ],
        out_specs=pl.BlockSpec((1, c_out_per, num_b * seq_len), lambda i: (i, 0, 0)),
        scratch_shapes=[pltpu.VMEM((k_dim, seq_len), jnp.float32)],  # im2col slab
        compiler_params=pltpu.CompilerParams(dimension_semantics=("parallel",)),
        cost_estimate=pl.CostEstimate(flops=flops,
                                      transcendentals=n * r * seq_len,
                                      bytes_accessed=bytes_accessed),
    )(x, w_flat, b_flat)


def init_conv1d_params(key, in_channels, out_channels, kernel_sizes):
    """Deterministic init matching the module: normal(std=sqrt(2/(Cin*k))), zero bias,
    weight_norm reparameterization (g = per-out-channel norm of v at init -> w == v)."""
    assert all(k % 2 == 1 for k in kernel_sizes)
    assert out_channels % len(kernel_sizes) == 0
    c_out_per = out_channels // len(kernel_sizes)
    params = []
    for k in kernel_sizes:
        key, sub = jax.random.split(key)
        std = math.sqrt(2.0 / (in_channels * k))
        v = std * jax.random.normal(sub, (c_out_per, in_channels, k), jnp.float32)
        v_norm = jnp.sqrt(jnp.sum(v * v, axis=(1, 2), keepdims=True))
        g = v_norm                                         # weight_norm g init
        w = g * v / v_norm
        b = jnp.zeros((c_out_per,), jnp.float32)
        params.append((w, b))
    return params


def _reference_forward(x, params):
    """Pure-JAX reference (lax.conv) for correctness checks."""
    outs = []
    for w, b in params:
        k = w.shape[-1]
        pad = (k - 1) // 2
        y = lax.conv_general_dilated(
            x, w, window_strides=(1,), padding=[(pad, pad)],
            dimension_numbers=("NCH", "OIH", "NCH"),
        ) + b[None, :, None]
        y = 0.5 * y * (1.0 + jnp.tanh(y * 0.7978845608 * (1.0 + 0.044715 * y * y)))
        outs.append(y)
    return jnp.concatenate(outs, axis=-1)


if __name__ == "__main__":
    key = jax.random.PRNGKey(0)
    k_x, k_p = jax.random.split(key)

    # small shapes consistent with the module: batch=2, in_channels=4, seq=16,
    # out_channels=8, kernel_sizes=(3, 5)  ->  output (2, 4, 32)
    batch, in_channels, seq_len = 2, 4, 16
    out_channels, kernel_sizes = 8, (3, 5)

    x = jax.random.normal(k_x, (batch, in_channels, seq_len), jnp.float32)
    params = init_conv1d_params(k_p, in_channels, out_channels, kernel_sizes)

    ref = jax.block_until_ready(_reference_forward(x, params))

    # f32 path
    out = jax.block_until_ready(conv1d_forward(x, params))
    assert out.shape == (batch, out_channels // len(kernel_sizes),
                         seq_len * len(kernel_sizes)), out.shape
    assert jnp.allclose(out, ref, atol=1e-4, rtol=1e-4), float(jnp.max(jnp.abs(out - ref)))

    # bf16-operand matmul path (MXU-native); accumulation/bias/GeLU stay in f32.
    out_bf16 = jax.block_until_ready(conv1d_forward(x, params, compute_dtype=jnp.bfloat16))
    assert out_bf16.shape == out.shape
    assert jnp.allclose(out_bf16, ref, atol=5e-2, rtol=5e-2), \
        float(jnp.max(jnp.abs(out_bf16 - ref)))

    print("KERNEL_OK")
</pallas_src>

<mosaic_0001>
module attributes {stable_mosaic.version = 11 : i64} {
  func.func @_fused_conv1d_gelu_kernel(%arg0: i32, %arg1: memref<1x4x16xf32, #tpu.memory_space<vmem>>, %arg2: memref<8x20xf32, #tpu.memory_space<vmem>>, %arg3: memref<8x1xf32, #tpu.memory_space<vmem>>, %arg4: memref<1x4x32xf32, #tpu.memory_space<vmem>>, %arg5: memref<20x16xf32, #tpu.memory_space<vmem>>) attributes {dimension_semantics = [#tpu.dimension_semantics<parallel>], iteration_bounds = array<i64: 2>, scalar_prefetch = 0 : i64, scratch_operands = 1 : i64, tpu.core_type = #tpu.core_type<tc>, window_params = [{transform_indices = @transform_0, window_bounds = array<i64: 1, 4, 16>}, {pipeline_mode = #tpu.pipeline_mode<synchronous>, transform_indices = @transform_1, window_bounds = array<i64: 8, 20>}, {pipeline_mode = #tpu.pipeline_mode<synchronous>, transform_indices = @transform_2, window_bounds = array<i64: 8, 1>}, {transform_indices = @transform_3, window_bounds = array<i64: 1, 4, 32>}]} {
    %c0 = arith.constant 0 : index
    %c0_0 = arith.constant 0 : index
    %c0_1 = arith.constant 0 : index
    %0 = vector.load %arg1[%c0, %c0_0, %c0_1] : memref<1x4x16xf32, #tpu.memory_space<vmem>>, vector<1x4x16xf32>
    %1 = vector.shape_cast %0 : vector<1x4x16xf32> to vector<4x16xf32>
    %cst = arith.constant 0.000000e+00 : f32
    %2 = vector.broadcast %cst : f32 to vector<20x16xf32>
    %c0_2 = arith.constant 0 : index
    %c0_3 = arith.constant 0 : index
    %3 = vector.load %arg5[%c0_2, %c0_3] : memref<20x16xf32, #tpu.memory_space<vmem>>, vector<20x16xf32>
    tpu.vector_store %arg5[%c0_2, %c0_3], %2 {strides = array<i32>} : memref<20x16xf32, #tpu.memory_space<vmem>>, vector<20x16xf32>,
    %4 = vector.extract_strided_slice %1 {offsets = [0, 0], sizes = [4, 14], strides = [1, 1]} : vector<4x16xf32> to vector<4x14xf32>
    %c0_4 = arith.constant 0 : index
    %c2 = arith.constant 2 : index
    %5 = vector.load %arg5[%c0_4, %c2] : memref<20x16xf32, #tpu.memory_space<vmem>>, vector<4x14xf32>
    tpu.vector_store %arg5[%c0_4, %c2], %4 {strides = array<i32>} : memref<20x16xf32, #tpu.memory_space<vmem>>, vector<4x14xf32>,
    %6 = vector.extract_strided_slice %1 {offsets = [0, 0], sizes = [4, 15], strides = [1, 1]} : vector<4x16xf32> to vector<4x15xf32>
    %c4 = arith.constant 4 : index
    %c1 = arith.constant 1 : index
    %7 = vector.load %arg5[%c4, %c1] : memref<20x16xf32, #tpu.memory_space<vmem>>, vector<4x15xf32>
    tpu.vector_store %arg5[%c4, %c1], %6 {strides = array<i32>} : memref<20x16xf32, #tpu.memory_space<vmem>>, vector<4x15xf32>,
    %c8 = arith.constant 8 : index
    %c0_5 = arith.constant 0 : index
    %8 = vector.load %arg5[%c8, %c0_5] : memref<20x16xf32, #tpu.memory_space<vmem>>, vector<4x16xf32>
    tpu.vector_store %arg5[%c8, %c0_5], %1 {strides = array<i32>} : memref<20x16xf32, #tpu.memory_space<vmem>>, vector<4x16xf32>,
    %9 = vector.extract_strided_slice %1 {offsets = [0, 1], sizes = [4, 15], strides = [1, 1]} : vector<4x16xf32> to vector<4x15xf32>
    %c12 = arith.constant 12 : index
    %c0_6 = arith.constant 0 : index
    %10 = vector.load %arg5[%c12, %c0_6] : memref<20x16xf32, #tpu.memory_space<vmem>>, vector<4x15xf32>
    tpu.vector_store %arg5[%c12, %c0_6], %9 {strides = array<i32>} : memref<20x16xf32, #tpu.memory_space<vmem>>, vector<4x15xf32>,
    %11 = vector.extract_strided_slice %1 {offsets = [0, 2], sizes = [4, 14], strides = [1, 1]} : vector<4x16xf32> to vector<4x14xf32>
    %c16 = arith.constant 16 : index
    %c0_7 = arith.constant 0 : index
    %12 = vector.load %arg5[%c16, %c0_7] : memref<20x16xf32, #tpu.memory_space<vmem>>, vector<4x14xf32>
    tpu.vector_store %arg5[%c16, %c0_7], %11 {strides = array<i32>} : memref<20x16xf32, #tpu.memory_space<vmem>>, vector<4x14xf32>,
    %c0_8 = arith.constant 0 : index
    %c0_9 = arith.constant 0 : index
    %13 = vector.load %arg2[%c0_8, %c0_9] : memref<8x20xf32, #tpu.memory_space<vmem>>, vector<8x20xf32>
    %c0_10 = arith.constant 0 : index
    %c0_11 = arith.constant 0 : index
    %14 = vector.load %arg5[%c0_10, %c0_11] : memref<20x16xf32, #tpu.memory_space<vmem>>, vector<20x16xf32>
    %cst_12 = arith.constant dense<0.000000e+00> : vector<8x16xf32>
    %15 = tpu.matmul %13, %14, %cst_12 {dimension_numbers = #tpu.dot_dimension_numbers<[1], [0], [0], [1], [0, 0, 1, 1], [], []>} : vector<8x20xf32>, vector<20x16xf32>, vector<8x16xf32> -> vector<8x16xf32>
    %c0_13 = arith.constant 0 : index
    %c0_14 = arith.constant 0 : index
    %16 = vector.load %arg3[%c0_13, %c0_14] : memref<8x1xf32, #tpu.memory_space<vmem>>, vector<8x1xf32>
    %17 = vector.broadcast %16 : vector<8x1xf32> to vector<8x16xf32>
    %18 = arith.addf %15, %17 : vector<8x16xf32>
    %cst_15 = arith.constant 5.000000e-01 : f32
    %19 = vector.broadcast %cst_15 : f32 to vector<8x16xf32>
    %20 = arith.mulf %19, %18 : vector<8x16xf32>
    %cst_16 = arith.constant 0.797884583 : f32
    %21 = vector.broadcast %cst_16 : f32 to vector<8x16xf32>
    %22 = arith.mulf %18, %21 : vector<8x16xf32>
    %cst_17 = arith.constant 4.471500e-02 : f32
    %23 = vector.broadcast %cst_17 : f32 to vector<8x16xf32>
    %24 = arith.mulf %23, %18 : vector<8x16xf32>
    %25 = arith.mulf %24, %18 : vector<8x16xf32>
    %cst_18 = arith.constant 1.000000e+00 : f32
    %26 = vector.broadcast %cst_18 : f32 to vector<8x16xf32>
    %27 = arith.addf %26, %25 : vector<8x16xf32>
    %28 = arith.mulf %22, %27 : vector<8x16xf32>
    %29 = math.tanh %28 : vector<8x16xf32>
    %cst_19 = arith.constant 1.000000e+00 : f32
    %30 = vector.broadcast %cst_19 : f32 to vector<8x16xf32>
    %31 = arith.addf %30, %29 : vector<8x16xf32>
    %32 = arith.mulf %20, %31 : vector<8x16xf32>
    %33 = vector.extract_strided_slice %32 {offsets = [0, 0], sizes = [4, 16], strides = [1, 1]} : vector<8x16xf32> to vector<4x16xf32>
    %c0_20 = arith.constant 0 : index
    %c0_21 = arith.constant 0 : index
    %c0_22 = arith.constant 0 : index
    %34 = vector.load %arg4[%c0_20, %c0_21, %c0_22] : memref<1x4x32xf32, #tpu.memory_space<vmem>>, vector<1x4x16xf32>
    %35 = vector.shape_cast %34 : vector<1x4x16xf32> to vector<4x16xf32>
    %36 = vector.shape_cast %33 : vector<4x16xf32> to vector<1x4x16xf32>
    tpu.vector_store %arg4[%c0_20, %c0_21, %c0_22], %36 {strides = array<i32>} : memref<1x4x32xf32, #tpu.memory_space<vmem>>, vector<1x4x16xf32>,
    %37 = vector.extract_strided_slice %32 {offsets = [4, 0], sizes = [4, 16], strides = [1, 1]} : vector<8x16xf32> to vector<4x16xf32>
    %c0_23 = arith.constant 0 : index
    %c0_24 = arith.constant 0 : index
    %c16_25 = arith.constant 16 : index
    %38 = vector.load %arg4[%c0_23, %c0_24, %c16_25] : memref<1x4x32xf32, #tpu.memory_space<vmem>>, vector<1x4x16xf32>
    %39 = vector.shape_cast %38 : vector<1x4x16xf32> to vector<4x16xf32>
    %40 = vector.shape_cast %37 : vector<4x16xf32> to vector<1x4x16xf32>
    tpu.vector_store %arg4[%c0_23, %c0_24, %c16_25], %40 {strides = array<i32>} : memref<1x4x32xf32, #tpu.memory_space<vmem>>, vector<1x4x16xf32>,
    return
  }
  func.func @transform_0(%arg0: i32) -> (i32, i32, i32) {
    %c0_i32 = arith.constant 0 : i32
    %c0_i32_0 = arith.constant 0 : i32
    %c0_i32_1 = arith.constant 0 : i32
    return %arg0, %c0_i32, %c0_i32_0 : i32, i32, i32
  }
  func.func @transform_1(%arg0: i32) -> (i32, i32) {
    %c0_i32 = arith.constant 0 : i32
    %c0_i32_0 = arith.constant 0 : i32
    %c0_i32_1 = arith.constant 0 : i32
    return %c0_i32, %c0_i32_0 : i32, i32
  }
  func.func @transform_2(%arg0: i32) -> (i32, i32) {
    %c0_i32 = arith.constant 0 : i32
    %c0_i32_0 = arith.constant 0 : i32
    %c0_i32_1 = arith.constant 0 : i32
    return %c0_i32, %c0_i32_0 : i32, i32
  }
  func.func @transform_3(%arg0: i32) -> (i32, i32, i32) {
    %c0_i32 = arith.constant 0 : i32
    %c0_i32_0 = arith.constant 0 : i32
    %c0_i32_1 = arith.constant 0 : i32
    return %arg0, %c0_i32, %c0_i32_0 : i32, i32, i32
  }
}

</mosaic_0001>

<bundles_post_ra>
// kernel: tpu_custom_call.1
= control target key start
LH: loop header
LB: loop body
LE: loop exit
PB: predicated region body
PF: predicated region fallthrough
CT: control target
= control target key end

     0   :  { %8 = vsyncpa [#allocation4], 0  ;;  %s756_s0 = inlined_call_operand.vmem [shape: f32[2,4,16], index: 0, kind: input, shape index: {}]   ;;  %s757_s1 = inlined_call_operand.hbm [shape: f32[8,20], index: 1, kind: input, shape index: {}]   ;;  %s758_s2 = inlined_call_operand.vmem [shape: f32[8,1], index: 2, kind: input, shape index: {}]   ;;  %s759_s3 = inlined_call_operand.hbm [shape: f32[2,4,32], index: 3, kind: output, shape index: {}]  }
   0x1   :  { %9 = vsyncpa [#allocation5], 0 }
   0x2   :  { %11 = vsyncpa [#allocation5 + $0x1], 0  ;;  %s615_s12 = smov 0   ;;  %s617_s13 = smov 0  }
   0x3   :  { %s619_s14 = smov 0   ;;  %s621_s15 = smov 0  }
   0x4 LB: > { %s636_s16 = sadd.s32 4294967295, %s582_s15   ;;  %s396_s17 = sadd.s32 4294967294, %s582_s15   ;;  %s582_s15 = sphi %s621_s15, %s775_s15   ;;  %s578_s14 = sphi %s619_s14, %s774_s14   ;;  %s574_s13 = sphi %s617_s13, %s773_s13   ;;  %s570_s12 = sphi %s615_s12, %s772_s12  }
   0x5   : > { %s640_s18 = sadd.s32 1, %s582_s15   ;;  %s92_s19 = sadd.s32 1, %s578_s14 }
   0x6   : > { %s89_s20 = ssub.s32 %s582_s15, %s640_s18  ;;  %p102_p0 = scmp.ne.s32.totalorder %s578_s14, %s574_s13 }
   0x7   : > { %p90_p1 = scmp.eq.s32.totalorder %s89_s20, 0  ;;  %p103_p2 = scmp.eq.s32.totalorder %s636_s16, 1 }
   0x8   : > { %p108_p3 = scmp.ne.s32.totalorder %s574_s13, %s570_s12  ;;  %p109_p4 = scmp.eq.s32.totalorder %s396_s17, 1 }
   0x9   : > { %s651_s21 = scalar_select %p90_p1, %s578_s14, %s92_s19  }
   0xa   : > { %p653_p5 = por %p103_p2, %p102_p0  ;;  %p657_p6 = por %p109_p4, %p108_p3 }
   0xb   : > { %p397_p7 = scmp.ge.s32.totalorder %s582_s15, 1  ;;  %p116_p8 = scmp.lt.s32.totalorder %s582_s15, 3 }
   0xc   : > { %s763_s22 = scalar_select %p653_p5, 1, 0 }
   0xd   : > { %s764_s23 = scalar_select %p657_p6, 1, 0 }
   0xe   : > { %p760_p9 = scmp.eq.s32.totalorder %s636_s16, 0  ;;  %p664_p10 = pnand %p397_p7, %p116_p8 }
   0xf   : > { %s584_s25 = smov [#allocation3]   ;;  %s488_s30 = scalar_lea.hbm %s757_s1, 128 }
  0x10   : > { %s765_s24 = scalar_select %p664_p10, 1, 0 }
  0x11   : > { %s129_s26 = sshll.u32 %s584_s25, 4  ;;  %p432_p11 = pneg %p664_p10  ;;  %s130_s26 = int_to_ptr.vmem [resolvable:$true] %s129_s26 }
  0x12   : > { %p489_p13 = scmp.ne.s32.totalorder %s757_s1, %s488_s30  ;;  %p495_p3 = scmp.lt.u32.totalorder %s488_s30, %s757_s1 }
  0x13   : > { %p672_p12 = pnand %p760_p9, %p432_p11 }
  0x15   : > { %p490_p0 = pneg %p672_p12 }
  0x17   : > { %p491_p1 = pnand %p490_p0, %p489_p13 }
  0x19   : > { %p492_p2 = pneg %p491_p1 }
  0x1b   : > { %p497_p4 = pnand %p495_p3, %p492_p2 }
  0x1d   : > { %500 = shalt.err (!%p497_p4)
}
  0x1e   : > { %s501_s8 = scalar_lea.vmem %s130_s26, 128  ;;  %p509_p9 = scmp.lt.s32.totalorder %s130_s26, %s130_s26 }
  0x1f   : > { %p502_p7 = scmp.ne.s32.totalorder %s130_s26, %s501_s8  ;;  %p510_p6 = scmp.lt.s32.totalorder %s501_s8, %s501_s8 }
  0x21   : > { %p504_p8 = pnand %p502_p7, %p490_p0  ;;  %p511_p5 = por %p510_p6, %p509_p9 }
  0x23   : > { %p505_p11 = pneg %p504_p8 }
  0x25   : > { %p512_p10 = pnand %p511_p5, %p505_p11 }
  0x27   : > { %515 = shalt.err (!%p512_p10)
}
  0x28   : > { %435 = dma.hbm_to_vmem [thread:$0]  (!%p672_p12), %s757_s1, 128, %s130_s26, [#allocation4]  }
  0x29   : > { %p767_p13 = scmp.ne.s32.totalorder %s765_s24, 0 }
  0x2a   : > { %p768_p1 = scmp.eq.s32.totalorder (!%p767_p13), %s636_s16, 0 }
  0x2b   : > { %152 = sbr.rel (%p767_p13) target bundleno = 558 (0x22e), region = 32 }
  0x32   : > { %561 = dma.done.wait (%p768_p1), [#allocation4], 128   ;;  %p769_p0 = pmov %p768_p1 }
  0x33   : > { %p175_p6 = scmp.lt.s32.totalorder %s636_s16, 1  ;;  %vm180_vm0 = vcmask 130048   ;;  %v585_v0 = vmov 0.0   ;;  %vm183_vm1 = vcmask 125952   ;;  %v586_v1 = vmov 0.0|0.0   ;;  %s587_s25 = smov 2  }
  0x34   : > { %563 = vsyncadd (%p769_p0), [#allocation4], 4294967168  ;;  %181 = vst.msk [vmem:[#allocation2] sm:$0xff] %vm180_vm0, %v585_v0  ;;  %423 = vmatprep.subr.bf16.mxu0 %v586_v1  ;;  %s588_s26 = smov 127   ;;  %s589_s27 = smov 1   ;;  %vm591_vm2 = vmmov 0  }
  0x35   : > { %182 = vst.msk [vmem:[#allocation2 + $0x8] sm:$0xff] %vm180_vm0, %v585_v0  ;;  %s176_s11 = scalar_select %p175_p6, %s636_s16, 1  ;;  %420 = vmatprep.mubr.msk.f32.mxu0 %vm591_vm2, %v585_v0  ;;  %v211_v3 = vld [vmem:[%s758_s2] sm:$0xff]  ;;  %v592_v4 = vmov 0   ;;  %vm189_vm3 = vcmask 125968   ;;  %vm200_vm4 = vcmask 117760  }
  0x36   : > { %184 = vst.msk [vmem:[#allocation2 + $0x10] sm:$0xf] %vm183_vm1, %v585_v0  ;;  %s590_s28 = smov 126   ;;  %485 = vset.pattern.permute.xlu0 %v592_v4  ;;  %vm194_vm5 = vcmask 125960   ;;  %vm205_vm6 = vcmask 109568   ;;  %vm221_vm7 = vcmask 1043456  }
  0x37   : > { %s403_s17 = sshll.u32 %s176_s11, 2  ;;  %v207_v13 = vld [vmem:[#allocation3] sm:$0xff]  ;;  %vm217_vm8 = vcmask 162816   ;;  %s172_s4 = sand.u32 1, %s574_s13   ;;  %vm309_vm9 = vcmask 261252  }
  0x38   : > { %s178_s24 = scalar_lea.vmem %s756_s0, %s403_s17  ;;  %s402_s5 = sshll.u32 %s172_s4, 2 }
  0x39   : > { %v179_v2 = vld [vmem:[%s178_s24] sm:$0xf]  ;;  %s593_s6 = smov 16   ;;  %s174_s7 = scalar_lea.vmem [#allocation6], %s402_s5 }
  0x3a   : > { %186 = vrot.lane.b32.xlu0 %v179_v2, %s587_s25  ;;  %197 = vrot.lane.b32.xlu1 %v179_v2, %s588_s26  ;;  %196 = vst.msk [vmem:[#allocation2 + $0x8] sm:$0xf] %vm183_vm1, %v179_v2  ;;  %s407_s8 = sshll.u32 %s636_s16, 6  ;;  %s325_s9 = sshll.u32 %s174_s7, 4  ;;  %s716_s9 = int_to_ptr.vmem [resolvable:$true] %s325_s9 }
  0x3b   : > { %s714_s17 = scalar_lea.hbm %s759_s3, %s407_s8  ;;  %s312_s19 = scalar_lea.sflag [#allocation5], %s172_s4 }
  0x3c   : > { %s516_s20 = scalar_lea.vmem %s716_s9, 64  ;;  %p770_p9 = scmp.ne.s32.totalorder %s763_s22, 0 }
  0x3d   : > { %p517_p5 = scmp.ne.s32.totalorder %s716_s9, %s516_s20  ;;  %s594_s16 = smov [#allocation6]  }
  0x3e   : > { %191 = vrot.lane.b32.xlu0 %v179_v2, %s589_s27  ;;  %202 = vrot.lane.b32.xlu1 %v179_v2, %s590_s28  ;;  %s520_s24 = sshll.u32 %s594_s16, 4  ;;  %s521_s24 = int_to_ptr.vmem [resolvable:$false] %s520_s24 }
  0x3f   : > { %p518_p10 = pnand %p517_p5, %p770_p9  ;;  %s522_s25 = scalar_lea.vmem %s521_s24, 128 }
  0x40   : > { %p523_p2 = scmp.lt.s32.totalorder %s716_s9, %s521_s24  ;;  %p524_p3 = scmp.lt.s32.totalorder %s522_s25, %s516_s20 }
  0x41   : > { %p519_p12 = pneg %p518_p10 }
  0x42   : > { %214 = vperm.xlu0 %485, %v211_v3   ;;  %p525_p4 = por %p524_p3, %p523_p2 }
  0x44   : > { %p526_p7 = pnand %p525_p4, %p519_p12 }
  0xac   : > { %v187_v5 = vpop.permute.xlu0 %186  ;;  %v198_v6 = vpop.permute.xlu1 %197 }
  0xad   : > { %190 = vst.msk [vmem:[#allocation2] sm:$0xf] %vm189_vm3, %v187_v5 }
  0xae   : > { %201 = vst.msk [vmem:[#allocation2 + $0xc] sm:$0xf] %vm200_vm4, %v198_v6 }
  0xb0   : > { %v192_v7 = vpop.permute.xlu0 %191  ;;  %v203_v8 = vpop.permute.xlu1 %202 }
  0xb1   : > { %195 = vst.msk [vmem:[#allocation2 + $0x4] sm:$0xf] %vm194_vm5, %v192_v7 }
  0xb2   : > { %206 = vst.msk [vmem:[#allocation2 + $0x10] sm:$0xf] %vm205_vm6, %v203_v8 }
  0xb5   : > { %v209_v9 = vld [vmem:[#allocation2 + $0x8] sm:$0xff] }
  0xb8   : > { %v208_v10 = vld [vmem:[#allocation2] sm:$0xff] }
  0xb9   : > { %v424_v11 = vpack.c.bf16 %v209_v9, %v208_v10  ;;  %v210_v12 = vld [vmem:[#allocation2 + $0x10] sm:$0xf] }
  0xbb   : > { %425 = vmatpush3.bf16.msra.mxu0 %v424_v11 }
  0xbc   : > { %418 = vmatprep.subr.mxu0 %v585_v0 }
  0xbf   : > { %419 = vmatpush3.msk.msra.mxu0 %vm221_vm7, %v210_v12 }
  0xc0   : > { %421 = vmatmul.mubr.msk.f32.vlgmr.msra.gmra.mrb[0].mxu0 %vm217_vm8, %v207_v13 }
  0xc1   : > { %v215_v14 = vpop.permute.xlu0 %214 }
 0x193   : > { %v291_v15 = vpop.f32.mrb[0].mxu0 }
 0x194   : > { %v292_v16 = vadd.f32 %v291_v15, %v215_v14  ;;  %v422_v17 = vpop.f32.mrb[1].mxu0 }
 0x196   : > { %v297_v18 = vmul.f32 0.044715, %v292_v16  ;;  %v296_v20 = vmul.f32 0.7978846, %v292_v16  ;;  %v295_v24 = vmul.f32 0.5, %v292_v16 }
 0x198   : > { %v298_v19 = vmul.f32 %v297_v18, %v292_v16 }
 0x19a   : > { %v299_v21 = vadd.f32 1.0, %v298_v19 }
 0x19c   : > { %v300_v22 = vmul.f32 %v299_v21, %v296_v20 }
 0x19e   : > { %486 = vtanh.f32 %v300_v22 }
 0x1a8   : > { %v487_v23 = vpop.eup %486 }
 0x1a9   : > { %v302_v25 = vadd.f32 1.0, %v487_v23 }
 0x1ab   : > { %v303_v26 = vmul.f32 %v302_v25, %v295_v24 }
 0x1ad   : > { %306 = vrot.lane.b32.xlu1 %v303_v26, %s593_s6  ;;  %304 = vst.msk [vmem:[%s174_s7] sm:$0xf] %vm183_vm1, %v303_v26 }
 0x21f   : > { %v307_v27 = vpop.permute.xlu1 %306 }
 0x220   : > { %310 = vst.msk [vmem:[%s174_s7 - $0x4] sm:$0xf0] %vm309_vm9, %v307_v27 }
 0x221   : > { %529 = shalt.err (!%p526_p7)
}
 0x222   : > { %s530_s26 = scalar_lea.hbm %s714_s17, 64  ;;  %s534_s29 = scalar_lea.hbm %s759_s3, 128 }
 0x223   : > { %p531_p8 = scmp.ne.s32.totalorder %s714_s17, %s530_s26  ;;  %p535_p1 = scmp.lt.u32.totalorder %s714_s17, %s759_s3 }
 0x224   : > { %p536_p0 = scmp.lt.u32.totalorder %s534_s29, %s530_s26  ;;  %p538_p5 = scmp.lt.u32.totalorder %s530_s26, %s714_s17 }
 0x225   : > { %p532_p11 = pnand %p531_p8, %p770_p9 }
 0x226   : > { %p537_p6 = por %p536_p0, %p535_p1 }
 0x227   : > { %p533_p13 = pneg %p532_p11 }
 0x228   : > { %p539_p10 = por %p538_p5, %p537_p6 }
 0x22a   : > { %p540_p12 = pnand %p539_p10, %p533_p13 }
 0x22c   : > { %543 = shalt.err (!%p540_p12)
}
 0x22d   : > { %430 = dma.vmem_to_hbm [thread:$0]  (%p770_p9), %s716_s9, 64, %s714_s17, %s312_s19  }
 0x22e PF: > { %p442_p2 = scmp.ge.s32.totalorder %s582_s15, 2  ;;  %s337_s5 = sand.u32 1, %s570_s12  }
 0x22f   : > { %p771_p3 = scmp.ne.s32.totalorder %s764_s23, 0  ;;  %s338_s6 = scalar_lea.sflag [#allocation5], %s337_s5 }
 0x231   : > { %p437_p4 = pnand %p442_p2, %p771_p3 }
 0x233   : > { %565 = dma.done.wait (!%p437_p4), %s338_s6, 64  }
 0x234   : > { %567 = vsyncadd (!%p437_p4), %s338_s6, 4294967232  ;;  %p14_p7 = scmp.ge.s32.totalorder %s640_s18, 4   ;;  %s772_s12 = smov %s574_s13 }
 0x235   : > { %s773_s13 = smov %s578_s14  ;;  %s774_s14 = smov %s651_s21 }
 0x236   : > { %s775_s15 = smov %s640_s18  ;;  %16 = sbr.rel (!%p14_p7) target bundleno = 4 (0x4), region = 72 }
 0x23d   :  { %343 = vsyncpa [#allocation4], 1 }
 0x23e   :  { %345 = vsyncpa [#allocation4 + $0x1], 1 }
 0x23f   :  { %346 = vsyncpa [#allocation5], 1 }
 0x240   :  { %348 = vsyncpa [#allocation5 + $0x1], 1 }

</bundles_post_ra>
